<compile_context>
chip_gen: v7x
topology: tpu7x:2x2x1
jax: 0.10.0
libtpu: 0.0.40
codegen_flags: <defaults>
</compile_context>

<pallas_src>
import functools

import jax
import jax.numpy as jnp
from jax.experimental import pallas as pl
from jax.experimental.pallas import tpu as pltpu


def _round_up(a: int, b: int) -> int:
    return (a + b - 1) // b * b


def _ensemble_matmul_kernel(x_ref, w_ref, o_ref):
    """One grid step = one (batch-tile, N-tile, K-tile) triple.

    x_ref: (tile_b, tile_k)  bf16 input tile
    w_ref: (tile_k, tile_n)  bf16 lane-packed ensemble weight tile
    o_ref: (tile_b, tile_n)  f32 output tile; block index constant across the
                             K axis -> resident VMEM accumulator.
    """
    k = pl.program_id(2)

    @pl.when(k == 0)
    def _init():
        o_ref[...] = jnp.zeros_like(o_ref)

    o_ref[...] += jnp.dot(
        x_ref[...], w_ref[...], preferred_element_type=jnp.float32)


def prepack_ensemble(weights, biases, *,
                     param_dtype=jnp.bfloat16,
                     tile_k=1024,
                     max_tile_n=1024,
                     pre_average=False):
    """One-time weight packing (call once at model init, NOT per forward).

    weights: (M, D, NC) float32, biases: (M, NC) float32.
    Returns (w_packed, biases_f32, meta).
    """
    if pre_average:
        # Linearity fast path: mean_m(x @ W_m + b_m) == x @ mean(W) + mean(b).
        weights = jnp.mean(weights, axis=0, keepdims=True)
        biases = jnp.mean(biases, axis=0, keepdims=True)

    M, D, NC = weights.shape
    n_out = M * NC
    Np = _round_up(n_out, 128)                # lane-dense packed width

    # N tiling: single tile when small; split >=2 ways when possible so the
    # v7x megacore can shard the weight stream across its two TensorCores.
    tile_n = min(max_tile_n, Np)
    if Np >= 256 and tile_n == Np:
        tile_n = _round_up(-(-Np // 2), 128)
    Npad = _round_up(Np, tile_n)

    tile_k = min(tile_k, _round_up(D, 128))
    Dp = _round_up(D, tile_k)

    # Lane-pack: (M, D, NC) -> (D, M*NC), column m*NC + c == W[m, :, c].
    w_packed = jnp.transpose(weights, (1, 0, 2)).reshape(D, n_out)
    w_p = (jnp.zeros((Dp, Npad), param_dtype)
           .at[:D, :n_out].set(w_packed.astype(param_dtype)))

    meta = dict(M=M, D=D, NC=NC, n_out=n_out, Dp=Dp, Npad=Npad,
                tile_k=tile_k, tile_n=tile_n)
    return w_p, biases.astype(jnp.float32), meta


def fundus_ensemble_forward(x_nchw, w_packed, biases, *, meta,
                            param_dtype=jnp.bfloat16, max_tile_b=512):
    """Ensemble forward: mean over models of (flatten(x) @ W_m + b_m).

    x_nchw  : (B, C, H, W) float32
    w_packed: (Dp, Npad)   bf16 pre-packed ensemble weights (from prepack)
    biases  : (M, NC)      float32
    returns : (B, NC)      float32
    """
    B = x_nchw.shape[0]
    M, D, NC = meta["M"], meta["D"], meta["NC"]
    n_out, Dp, Npad = meta["n_out"], meta["Dp"], meta["Npad"]
    tile_k, tile_n = meta["tile_k"], meta["tile_n"]

    x_flat = x_nchw.reshape(B, D)             # matches torch x.view(B, -1)

    # Batch: pad to 16 sublanes (bf16 vreg packing); collapse to a single tile
    # whenever it fits so the packed W streams from HBM exactly once.
    Bp = _round_up(B, 16)
    if Bp <= max_tile_b:
        tile_b = Bp
    else:
        tile_b = max_tile_b
        Bp = _round_up(Bp, tile_b)

    x_p = (jnp.zeros((Bp, Dp), param_dtype)
           .at[:B, :D].set(x_flat.astype(param_dtype)))

    grid = (Bp // tile_b, Npad // tile_n, Dp // tile_k)
    n_b, n_n, n_k = grid

    # Per-step VMEM footprint (double-buffered in/out) -> generation-safe cap.
    per_step = (2 * tile_b * tile_k * 2       # x tiles (bf16, double-buffered)
                + 2 * tile_k * tile_n * 2     # W tiles (bf16, double-buffered)
                + 2 * tile_b * tile_n * 4)    # f32 output / accumulator
    vmem_limit = min(max(per_step + (4 << 20), 16 << 20), 48 << 20)

    bytes_accessed = (n_n * Bp * Dp * 2       # x re-streamed once per N tile
                      + n_b * Dp * Npad * 2   # W re-streamed once per B tile
                      + Bp * Npad * 4)        # f32 output writeback

    out_padded = pl.pallas_call(
        _ensemble_matmul_kernel,
        out_shape=jax.ShapeDtypeStruct((Bp, Npad), jnp.float32),
        grid_spec=pltpu.PrefetchScalarGridSpec(
            num_scalar_prefetch=0,
            grid=grid,
            in_specs=[
                # Input tile: shared across the whole lane-packed ensemble.
                pl.BlockSpec((tile_b, tile_k), lambda i, j, k: (i, k)),
                # Lane-packed ensemble weight tile.
                pl.BlockSpec((tile_k, tile_n), lambda i, j, k: (k, j)),
            ],
            # Output block index constant across the K axis -> resident f32
            # accumulator in VMEM (K axis is "arbitrary").
            out_specs=pl.BlockSpec((tile_b, tile_n), lambda i, j, k: (i, j)),
        ),
        compiler_params=pltpu.CompilerParams(
            dimension_semantics=("parallel", "parallel", "arbitrary"),
            vmem_limit_bytes=vmem_limit,
        ),
        cost_estimate=pl.CostEstimate(
            flops=2 * Bp * Dp * Npad,
            transcendentals=0,
            bytes_accessed=bytes_accessed,
        ),
    )(x_p, w_packed)

    # Tiny plain-JAX epilogue: unpack per-model logits, add per-model biases,
    # average over the ensemble axis (== mean_m(x @ W_m + b_m)).
    logits = out_padded[:B, :n_out].reshape(B, M, NC)
    logits = logits + biases[None, :, :]
    return jnp.mean(logits, axis=1)


if __name__ == "__main__":
    # Small, deterministic setup consistent with the module's forward.
    B, C, H, W = 2, 4, 16, 16
    D = C * H * W
    NC = 8          # classes per fundus classifier
    M = 3           # ensemble size

    key = jax.random.PRNGKey(0)
    kx, kw, kb = jax.random.split(key, 3)

    x = jax.random.normal(kx, (B, C, H, W), dtype=jnp.float32)
    weights = jax.random.normal(kw, (M, D, NC), dtype=jnp.float32) * 0.02
    biases = jax.random.normal(kb, (M, NC), dtype=jnp.float32) * 0.1

    # One-time pack (model init), NOT in the per-call path.
    w_packed, b_f32, meta = prepack_ensemble(weights, biases)
    w_packed = jax.block_until_ready(w_packed)

    fwd = jax.jit(functools.partial(fundus_ensemble_forward, meta=meta))
    out = fwd(x, w_packed, b_f32)
    out = jax.block_until_ready(out)

    # Pure-JAX reference with the same bf16 weight/input cast as the kernel.
    x_flat = x.reshape(B, D).astype(jnp.bfloat16).astype(jnp.float32)
    w_ref = weights.astype(jnp.bfloat16).astype(jnp.float32)
    ref = jnp.mean(
        jnp.stack([x_flat @ w_ref[m] + biases[m] for m in range(M)]), axis=0)

    assert out.shape == (B, NC), out.shape
    assert jnp.allclose(out, ref, atol=2e-3, rtol=2e-3), (
        float(jnp.max(jnp.abs(out - ref))))

    print("KERNEL_OK")
</pallas_src>

<mosaic_0001>
module attributes {stable_mosaic.version = 11 : i64} {
  func.func @_ensemble_matmul_kernel(%arg0: i32, %arg1: i32, %arg2: i32, %arg3: memref<16x1024xbf16, #tpu.memory_space<vmem>>, %arg4: memref<1024x128xbf16, #tpu.memory_space<vmem>>, %arg5: memref<16x128xf32, #tpu.memory_space<vmem>>) attributes {dimension_semantics = [#tpu.dimension_semantics<parallel>, #tpu.dimension_semantics<parallel>, #tpu.dimension_semantics<arbitrary>], iteration_bounds = array<i64: 1, 1, 1>, scalar_prefetch = 0 : i64, scratch_operands = 0 : i64, tpu.core_type = #tpu.core_type<tc>, window_params = [{transform_indices = @transform_0, window_bounds = array<i64: 16, 1024>}, {transform_indices = @transform_1, window_bounds = array<i64: 1024, 128>}, {transform_indices = @transform_2, window_bounds = array<i64: 16, 128>}]} {
    %c0_i32 = arith.constant 0 : i32
    %0 = arith.cmpi eq, %arg2, %c0_i32 : i32
    %1 = arith.extui %0 : i1 to i32
    %c0_i32_0 = arith.constant 0 : i32
    %2 = arith.cmpi ne, %1, %c0_i32_0 : i32
    scf.if %2 {
      %cst_8 = arith.constant 0.000000e+00 : f32
      %9 = vector.broadcast %cst_8 : f32 to vector<16x128xf32>
      %c0_9 = arith.constant 0 : index
      %c0_10 = arith.constant 0 : index
      %10 = vector.load %arg5[%c0_9, %c0_10] : memref<16x128xf32, #tpu.memory_space<vmem>>, vector<16x128xf32>
      tpu.vector_store %arg5[%c0_9, %c0_10], %9 {strides = array<i32>} : memref<16x128xf32, #tpu.memory_space<vmem>>, vector<16x128xf32>,
    } else {
    }
    %c0 = arith.constant 0 : index
    %c0_1 = arith.constant 0 : index
    %3 = vector.load %arg5[%c0, %c0_1] : memref<16x128xf32, #tpu.memory_space<vmem>>, vector<16x128xf32>
    %c0_2 = arith.constant 0 : index
    %c0_3 = arith.constant 0 : index
    %4 = vector.load %arg3[%c0_2, %c0_3] : memref<16x1024xbf16, #tpu.memory_space<vmem>>, vector<16x1024xbf16>
    %c0_4 = arith.constant 0 : index
    %c0_5 = arith.constant 0 : index
    %5 = vector.load %arg4[%c0_4, %c0_5] : memref<1024x128xbf16, #tpu.memory_space<vmem>>, vector<1024x128xbf16>
    %cst = arith.constant dense<0.000000e+00> : vector<16x128xf32>
    %6 = tpu.matmul %4, %5, %cst {dimension_numbers = #tpu.dot_dimension_numbers<[1], [0], [0], [1], [0, 0, 1, 1], [], []>} : vector<16x1024xbf16>, vector<1024x128xbf16>, vector<16x128xf32> -> vector<16x128xf32>
    %7 = arith.addf %3, %6 : vector<16x128xf32>
    %c0_6 = arith.constant 0 : index
    %c0_7 = arith.constant 0 : index
    %8 = vector.load %arg5[%c0_6, %c0_7] : memref<16x128xf32, #tpu.memory_space<vmem>>, vector<16x128xf32>
    tpu.vector_store %arg5[%c0_6, %c0_7], %7 {strides = array<i32>} : memref<16x128xf32, #tpu.memory_space<vmem>>, vector<16x128xf32>,
    return
  }
  func.func @transform_0(%arg0: i32, %arg1: i32, %arg2: i32) -> (i32, i32) {
    %c0_i32 = arith.constant 0 : i32
    return %arg0, %arg2 : i32, i32
  }
  func.func @transform_1(%arg0: i32, %arg1: i32, %arg2: i32) -> (i32, i32) {
    %c0_i32 = arith.constant 0 : i32
    return %arg2, %arg1 : i32, i32
  }
  func.func @transform_2(%arg0: i32, %arg1: i32, %arg2: i32) -> (i32, i32) {
    %c0_i32 = arith.constant 0 : i32
    return %arg0, %arg1 : i32, i32
  }
}

</mosaic_0001>

<bundles_post_ra>
// kernel: fundus_ensemble_forward.1
= control target key start
LH: loop header
LB: loop body
LE: loop exit
PB: predicated region body
PF: predicated region fallthrough
CT: control target
= control target key end

     0   :  { %7 = vsyncpa [#allocation3], 0  ;;  %s1019_s9 = smov [#allocation2]   ;;  %s1079_s0 = inlined_call_operand.vmem [shape: bf16[16,1024], index: 0, kind: input, shape index: {}]   ;;  %s1080_s1 = inlined_call_operand.hbm [shape: bf16[1024,128], index: 1, kind: input, shape index: {}]   ;;  %s1081_s2 = inlined_call_operand.vmem [shape: f32[16,128], index: 2, kind: output, shape index: {}]  }
   0x1   :  { %s15_s10 = sshll.u32 %s1019_s9, 4  ;;  %s995_s13 = scalar_lea.hbm %s1080_s1, 8192  ;;  %s16_s10 = int_to_ptr.vmem [resolvable:$true] %s15_s10 }
   0x2   :  { %p996_p0 = scmp.ne.s32.totalorder %s1080_s1, %s995_s13  ;;  %p999_p1 = scmp.lt.u32.totalorder %s995_s13, %s1080_s1 }
   0x4   :  { %p1001_p2 = pnand %p999_p1, %p996_p0 }
   0x6   :  { %1004 = shalt.err (!%p1001_p2)
}
   0x7   :  { %s1005_s18 = scalar_lea.vmem %s16_s10, 8192  ;;  %p1010_p4 = scmp.lt.s32.totalorder %s16_s10, %s16_s10 }
   0x8   :  { %p1006_p3 = scmp.ne.s32.totalorder %s16_s10, %s1005_s18  ;;  %p1011_p5 = scmp.lt.s32.totalorder %s1005_s18, %s1005_s18 }
   0xa   :  { %p1012_p6 = por %p1011_p5, %p1010_p4 }
   0xc   :  { %p1013_p7 = pnand %p1012_p6, %p1006_p3 }
   0xe   :  { %1016 = shalt.err (!%p1013_p7)
}
   0xf   :  { %s1020_s19 = smov 64   ;;  %s1021_s20 = smov 4  }
  0x10   :  { %21 = dma.hbm_to_vmem [thread:$0]  %s1080_s1, 8192, %s16_s10, [#allocation3], %s1020_s19, %s1020_s19, %s1021_s20  }
  0x11   :  { %1017 = dma.done.wait [#allocation3], 8192  }
  0x12   :  { %1018 = vsyncadd [#allocation3], 4294959104  ;;  %v931_v0 = vld [vmem:[#allocation2 + $0x40] sm:$0xff]   ;;  %v935_v4 = vld [vmem:[#allocation2 + $0x48] sm:$0xff]  }
  0x13   :  { %v932_v1 = vld [vmem:[#allocation2 + $0xc0] sm:$0xff]   ;;  %839 = vmatprep.subr.bf16.mxu0 %v931_v0  ;;  %v936_v5 = vld [vmem:[#allocation2 + $0xc8] sm:$0xff]   ;;  %v939_v8 = vld [vmem:[#allocation2 + $0x50] sm:$0xff]  }
  0x14   :  { %v933_v2 = vld [vmem:[#allocation2] sm:$0xff]   ;;  %861 = vmatprep.subr.bf16.mxu1 %v932_v1  ;;  %v937_v6 = vld [vmem:[#allocation2 + $0x8] sm:$0xff]   ;;  %v940_v9 = vld [vmem:[#allocation2 + $0xd0] sm:$0xff]  }
  0x15   :  { %v934_v3 = vld [vmem:[#allocation2 + $0x80] sm:$0xff]   ;;  %840 = vmatpush3.bf16.msra.mxu0 %v933_v2  ;;  %v938_v7 = vld [vmem:[#allocation2 + $0x88] sm:$0xff]   ;;  %v941_v10 = vld [vmem:[#allocation2 + $0x10] sm:$0xff]  }
  0x16   :  { %862 = vmatpush3.bf16.msra.mxu1 %v934_v3  ;;  %841 = vmatprep.subr.bf16.mxu0 %v935_v4  ;;  %v942_v11 = vld [vmem:[#allocation2 + $0x90] sm:$0xff]   ;;  %v943_v12 = vld [vmem:[#allocation2 + $0x58] sm:$0xff]   ;;  %v947_v16 = vld [vmem:[#allocation2 + $0x60] sm:$0xff]  }
  0x17   :  { %863 = vmatprep.subr.bf16.mxu1 %v936_v5  ;;  %v944_v13 = vld [vmem:[#allocation2 + $0xd8] sm:$0xff]   ;;  %v948_v17 = vld [vmem:[#allocation2 + $0xe0] sm:$0xff]   ;;  %v951_v20 = vld [vmem:[#allocation2 + $0x68] sm:$0xff]  }
  0x18   :  { %v945_v14 = vld [vmem:[#allocation2 + $0x18] sm:$0xff]   ;;  %v949_v18 = vld [vmem:[#allocation2 + $0x20] sm:$0xff]   ;;  %v952_v21 = vld [vmem:[#allocation2 + $0xe8] sm:$0xff]  }
  0x19   :  { %842 = vmatpush3.bf16.msra.mxu0 %v937_v6  ;;  %v946_v15 = vld [vmem:[#allocation2 + $0x98] sm:$0xff]   ;;  %v950_v19 = vld [vmem:[#allocation2 + $0xa0] sm:$0xff]   ;;  %v953_v22 = vld [vmem:[#allocation2 + $0x28] sm:$0xff]  }
  0x1a   :  { %864 = vmatpush3.bf16.msra.mxu1 %v938_v7  ;;  %843 = vmatprep.subr.bf16.mxu0 %v939_v8  ;;  %v954_v23 = vld [vmem:[#allocation2 + $0xa8] sm:$0xff]   ;;  %v955_v24 = vld [vmem:[#allocation2 + $0x70] sm:$0xff]   ;;  %v959_v28 = vld [vmem:[#allocation2 + $0x78] sm:$0xff]  }
  0x1b   :  { %865 = vmatprep.subr.bf16.mxu1 %v940_v9  ;;  %v956_v25 = vld [vmem:[#allocation2 + $0xf0] sm:$0xff]   ;;  %v960_v29 = vld [vmem:[#allocation2 + $0xf8] sm:$0xff]   ;;  %v34_v32 = vld [vmem:[%s1079_s0] sm:$0xff] }
  0x1c   :  { %v957_v26 = vld [vmem:[#allocation2 + $0x30] sm:$0xff]   ;;  %v961_v30 = vld [vmem:[#allocation2 + $0x38] sm:$0xff]   ;;  %v38_v33 = vld [vmem:[%s1079_s0 + $0x20] sm:$0xff] }
  0x1d   :  { %844 = vmatpush3.bf16.msra.mxu0 %v941_v10  ;;  %v958_v27 = vld [vmem:[#allocation2 + $0xb0] sm:$0xff]   ;;  %v962_v31 = vld [vmem:[#allocation2 + $0xb8] sm:$0xff]   ;;  %v35_v34 = vld [vmem:[%s1079_s0 + $0x8] sm:$0xff]  ;;  %v767_v35 = vcombine.low %v34_v32, %v38_v33  ;;  %v768_v36 = vcombine.high %v34_v32, %v38_v33 }
  0x1e   :  { %866 = vmatpush3.bf16.msra.mxu1 %v942_v11  ;;  %845 = vmatprep.subr.bf16.mxu0 %v943_v12  ;;  %v39_v37 = vld [vmem:[%s1079_s0 + $0x28] sm:$0xff]  ;;  %v963_v40 = vld [vmem:[#allocation2 + $0x140] sm:$0xff]   ;;  %v971_v48 = vld [vmem:[#allocation2 + $0x150] sm:$0xff]  }
  0x1f   :  { %867 = vmatprep.subr.bf16.mxu1 %v944_v13  ;;  %v769_v38 = vcombine.low %v35_v34, %v39_v37  ;;  %v770_v39 = vcombine.high %v35_v34, %v39_v37  ;;  %626 = vmatprep.mubr.bf16.mxu0 %v768_v36  ;;  %v964_v41 = vld [vmem:[#allocation2 + $0x1c0] sm:$0xff]   ;;  %v967_v44 = vld [vmem:[#allocation2 + $0x148] sm:$0xff]   ;;  %v972_v49 = vld [vmem:[#allocation2 + $0x1d0] sm:$0xff]  }
  0x20   :  { %v965_v42 = vld [vmem:[#allocation2 + $0x100] sm:$0xff]   ;;  %v968_v45 = vld [vmem:[#allocation2 + $0x1c8] sm:$0xff]   ;;  %v973_v50 = vld [vmem:[#allocation2 + $0x110] sm:$0xff]  }
  0x21   :  { %846 = vmatpush3.bf16.msra.mxu0 %v945_v14  ;;  %667 = vmatprep.mubr.bf16.mxu1 %v770_v39  ;;  %v966_v43 = vld [vmem:[#allocation2 + $0x180] sm:$0xff]   ;;  %v969_v46 = vld [vmem:[#allocation2 + $0x108] sm:$0xff]   ;;  %v974_v51 = vld [vmem:[#allocation2 + $0x190] sm:$0xff]  }
  0x22   :  { %868 = vmatpush3.bf16.msra.mxu1 %v946_v15  ;;  %847 = vmatprep.subr.bf16.mxu0 %v947_v16  ;;  %v970_v47 = vld [vmem:[#allocation2 + $0x188] sm:$0xff]   ;;  %v975_v52 = vld [vmem:[#allocation2 + $0x158] sm:$0xff]   ;;  %v979_v56 = vld [vmem:[#allocation2 + $0x160] sm:$0xff]  }
  0x23   :  { %869 = vmatprep.subr.bf16.mxu1 %v948_v17  ;;  %v976_v53 = vld [vmem:[#allocation2 + $0x1d8] sm:$0xff]   ;;  %v980_v57 = vld [vmem:[#allocation2 + $0x1e0] sm:$0xff]   ;;  %v983_v60 = vld [vmem:[#allocation2 + $0x168] sm:$0xff]  }
  0x24   :  { %v977_v54 = vld [vmem:[#allocation2 + $0x118] sm:$0xff]   ;;  %v981_v58 = vld [vmem:[#allocation2 + $0x120] sm:$0xff]   ;;  %v984_v61 = vld [vmem:[#allocation2 + $0x1e8] sm:$0xff]  }
  0x25   :  { %848 = vmatpush3.bf16.msra.mxu0 %v949_v18  ;;  %v978_v55 = vld [vmem:[#allocation2 + $0x198] sm:$0xff]   ;;  %v982_v59 = vld [vmem:[#allocation2 + $0x1a0] sm:$0xff]   ;;  %v985_v62 = vld [vmem:[#allocation2 + $0x128] sm:$0xff]  }
  0x26   :  { %870 = vmatpush3.bf16.msra.mxu1 %v950_v19  ;;  %849 = vmatprep.subr.bf16.mxu0 %v951_v20  ;;  %v986_v63 = vld [vmem:[#allocation2 + $0x1a8] sm:$0xff]   ;;  %v987_v0 = vld [vmem:[#allocation2 + $0x170] sm:$0xff]   ;;  %v991_v4 = vld [vmem:[#allocation2 + $0x178] sm:$0xff]  }
  0x27   :  { %871 = vmatprep.subr.bf16.mxu1 %v952_v21  ;;  %v988_v1 = vld [vmem:[#allocation2 + $0x1f0] sm:$0xff]   ;;  %v992_v5 = vld [vmem:[#allocation2 + $0x1f8] sm:$0xff]  }
  0x28   :  { %v989_v2 = vld [vmem:[#allocation2 + $0x130] sm:$0xff]   ;;  %v993_v6 = vld [vmem:[#allocation2 + $0x138] sm:$0xff]  }
  0x29   :  { %850 = vmatpush3.bf16.msra.mxu0 %v953_v22  ;;  %v990_v3 = vld [vmem:[#allocation2 + $0x1b0] sm:$0xff]   ;;  %v994_v7 = vld [vmem:[#allocation2 + $0x1b8] sm:$0xff]  }
  0x2a   :  { %872 = vmatpush3.bf16.msra.mxu1 %v954_v23  ;;  %851 = vmatprep.subr.bf16.mxu0 %v955_v24  ;;  %v36_v8 = vld [vmem:[%s1079_s0 + $0x10] sm:$0xff]  ;;  %v37_v12 = vld [vmem:[%s1079_s0 + $0x18] sm:$0xff] }
  0x2b   :  { %873 = vmatprep.subr.bf16.mxu1 %v956_v25  ;;  %v40_v9 = vld [vmem:[%s1079_s0 + $0x30] sm:$0xff]  ;;  %v41_v13 = vld [vmem:[%s1079_s0 + $0x38] sm:$0xff] }
  0x2c   :  { %v771_v10 = vcombine.low %v36_v8, %v40_v9  ;;  %v772_v11 = vcombine.high %v36_v8, %v40_v9  ;;  %v773_v14 = vcombine.low %v37_v12, %v41_v13  ;;  %v774_v15 = vcombine.high %v37_v12, %v41_v13 }
  0x2d   :  { %852 = vmatpush3.bf16.msra.mxu0 %v957_v26 }
  0x2e   :  { %874 = vmatpush3.bf16.msra.mxu1 %v958_v27  ;;  %853 = vmatprep.subr.bf16.mxu0 %v959_v28 }
  0x2f   :  { %875 = vmatprep.subr.bf16.mxu1 %v960_v29 }
  0x31   :  { %854 = vmatpush3.bf16.msra.mxu0 %v961_v30 }
  0x32   :  { %876 = vmatpush3.bf16.msra.mxu1 %v962_v31  ;;  %883 = vmatprep.subr.bf16.mxu0 %v963_v40 }
  0x33   :  { %905 = vmatprep.subr.bf16.mxu1 %v964_v41 }
  0x34   :  { %627 = vmatmul.mubr.bf16.vlgmr.msra.gmra.mrb[0].mxu0 %v767_v35 }
  0x35   :  { %668 = vmatmul.mubr.bf16.vlgmr.msra.gmra.mrb[0].mxu1 %v769_v38  ;;  %884 = vmatpush3.bf16.msra.mxu0 %v965_v42 }
  0x36   :  { %906 = vmatpush3.bf16.msra.mxu1 %v966_v43  ;;  %885 = vmatprep.subr.bf16.mxu0 %v967_v44 }
  0x37   :  { %907 = vmatprep.subr.bf16.mxu1 %v968_v45  ;;  %708 = vmatprep.mubr.bf16.mxu0 %v772_v11 }
  0x38   :  { %749 = vmatprep.mubr.bf16.mxu1 %v774_v15 }
  0x39   :  { %886 = vmatpush3.bf16.msra.mxu0 %v969_v46 }
  0x3a   :  { %908 = vmatpush3.bf16.msra.mxu1 %v970_v47  ;;  %887 = vmatprep.subr.bf16.mxu0 %v971_v48 }
  0x3b   :  { %909 = vmatprep.subr.bf16.mxu1 %v972_v49 }
  0x3d   :  { %888 = vmatpush3.bf16.msra.mxu0 %v973_v50 }
  0x3e   :  { %910 = vmatpush3.bf16.msra.mxu1 %v974_v51  ;;  %889 = vmatprep.subr.bf16.mxu0 %v975_v52 }
  0x3f   :  { %911 = vmatprep.subr.bf16.mxu1 %v976_v53 }
  0x41   :  { %890 = vmatpush3.bf16.msra.mxu0 %v977_v54 }
  0x42   :  { %912 = vmatpush3.bf16.msra.mxu1 %v978_v55  ;;  %891 = vmatprep.subr.bf16.mxu0 %v979_v56 }
  0x43   :  { %913 = vmatprep.subr.bf16.mxu1 %v980_v57 }
  0x45   :  { %892 = vmatpush3.bf16.msra.mxu0 %v981_v58 }
  0x46   :  { %914 = vmatpush3.bf16.msra.mxu1 %v982_v59  ;;  %893 = vmatprep.subr.bf16.mxu0 %v983_v60 }
  0x47   :  { %915 = vmatprep.subr.bf16.mxu1 %v984_v61 }
  0x49   :  { %894 = vmatpush3.bf16.msra.mxu0 %v985_v62 }
  0x4a   :  { %916 = vmatpush3.bf16.msra.mxu1 %v986_v63  ;;  %895 = vmatprep.subr.bf16.mxu0 %v987_v0 }
  0x4b   :  { %917 = vmatprep.subr.bf16.mxu1 %v988_v1 }
  0x4d   :  { %896 = vmatpush3.bf16.msra.mxu0 %v989_v2 }
  0x4e   :  { %918 = vmatpush3.bf16.msra.mxu1 %v990_v3  ;;  %897 = vmatprep.subr.bf16.mxu0 %v991_v4 }
  0x4f   :  { %919 = vmatprep.subr.bf16.mxu1 %v992_v5 }
  0x51   :  { %898 = vmatpush3.bf16.msra.mxu0 %v993_v6 }
  0x52   :  { %920 = vmatpush3.bf16.msra.mxu1 %v994_v7 }
  0x54   :  { %709 = vmatmul.mubr.bf16.vlgmr.msra.gmra.mrb[4].mxu0 %v771_v10 }
  0x55   :  { %750 = vmatmul.mubr.bf16.vlgmr.msra.gmra.mrb[4].mxu1 %v773_v14 }
 0x107   :  { %v855_v16 = vpop.f32.mrb[0].mxu0 }
 0x108   :  { %v877_v17 = vpop.f32.mrb[0].mxu1  ;;  %v856_v18 = vpop.f32.mrb[1].mxu0 }
 0x109   :  { %v857_v19 = vadd.f32 %v856_v18, %v855_v16  ;;  %v878_v20 = vpop.f32.mrb[1].mxu1  ;;  %v858_v21 = vpop.f32.mrb[2].mxu0 }
 0x10a   :  { %v879_v22 = vadd.f32 %v878_v20, %v877_v17  ;;  %v880_v23 = vpop.f32.mrb[2].mxu1  ;;  %v859_v24 = vpop.f32.mrb[3].mxu0 }
 0x10b   :  { %v860_v25 = vadd.f32 %v859_v24, %v858_v21  ;;  %v881_v26 = vpop.f32.mrb[3].mxu1 }
 0x10c   :  { %v670_v27 = vadd.f32 %v879_v22, %v857_v19  ;;  %v882_v28 = vadd.f32 %v881_v26, %v880_v23 }
 0x10e   :  { %v673_v29 = vadd.f32 %v882_v28, %v860_v25 }
 0x127   :  { %v899_v30 = vpop.f32.mrb[4].mxu0 }
 0x128   :  { %v921_v31 = vpop.f32.mrb[4].mxu1  ;;  %v900_v32 = vpop.f32.mrb[5].mxu0 }
 0x129   :  { %v901_v33 = vadd.f32 %v900_v32, %v899_v30  ;;  %v922_v34 = vpop.f32.mrb[5].mxu1  ;;  %v902_v35 = vpop.f32.mrb[6].mxu0 }
 0x12a   :  { %v923_v36 = vadd.f32 %v922_v34, %v921_v31  ;;  %v924_v37 = vpop.f32.mrb[6].mxu1  ;;  %v903_v38 = vpop.f32.mrb[7].mxu0 }
 0x12b   :  { %v711_v39 = vadd.f32 %v901_v33, %v670_v27  ;;  %v904_v40 = vadd.f32 %v903_v38, %v902_v35  ;;  %v925_v41 = vpop.f32.mrb[7].mxu1 }
 0x12c   :  { %v926_v42 = vadd.f32 %v925_v41, %v924_v37 }
 0x12d   :  { %v752_v43 = vadd.f32 %v923_v36, %v711_v39  ;;  %v714_v44 = vadd.f32 %v904_v40, %v673_v29 }
 0x12f   :  { %v755_v45 = vadd.f32 %v926_v42, %v714_v44  ;;  %760 = vst [vmem:[%s1081_s2] sm:$0xff] %v752_v43 }
 0x131   :  { %761 = vst [vmem:[%s1081_s2 + $0x8] sm:$0xff] %v755_v45 }
 0x132   :  { %766 = vsyncpa [#allocation3], 1 }

</bundles_post_ra>
